<compile_context>
chip_gen: v7x
topology: tpu7x:2x2x1
jax: 0.10.0
libtpu: 0.0.40
codegen_flags: <defaults>
</compile_context>

<pallas_src>
import numpy as np
import jax
import jax.numpy as jnp
from jax import lax
from jax.experimental import pallas as pl
from jax.experimental.pallas import tpu as pltpu


def compute_embed_dim(n_cat: int) -> int:
    return min(600, 2 * round(1.6 * n_cat ** 0.56))


def _round_up(x: int, m: int) -> int:
    return ((x + m - 1) // m) * m


# --------------------- Kernel 1: hoisted input projection -------------------

def _proj_kernel(x_ref, wih_ref, b_ref, gx_ref):
    sc, b, ep = x_ref.shape
    g = gx_ref.shape[-1]
    x2d = x_ref[...].reshape(sc * b, ep)
    gx = jnp.dot(x2d, wih_ref[...], preferred_element_type=jnp.float32) + b_ref[...]
    gx_ref[...] = gx.reshape(sc, b, g)


def input_projection(x_sbe, w_ih_t, bias, sc):
    """gx[t] = x[t] @ W_ih + (bias_ih + bias_hh), chunked over S ("parallel")."""
    S, B, Ep = x_sbe.shape
    G = w_ih_t.shape[1]
    return pl.pallas_call(
        _proj_kernel,
        out_shape=jax.ShapeDtypeStruct((S, B, G), jnp.float32),
        grid=(S // sc,),
        in_specs=[
            pl.BlockSpec((sc, B, Ep), lambda i: (i, 0, 0)),
            pl.BlockSpec((Ep, G), lambda i: (0, 0)),
            pl.BlockSpec((1, G), lambda i: (0, 0)),
        ],
        out_specs=pl.BlockSpec((sc, B, G), lambda i: (i, 0, 0)),
        compiler_params=pltpu.CompilerParams(
            dimension_semantics=("parallel",),
            vmem_limit_bytes=32 * 1024 * 1024),
    )(x_sbe, w_ih_t, bias)


# ----------------------- Kernel 2: two-pass recurrence ----------------------

def _make_lstm_kernel(S, B, H):
    """Two-pass single-layer LSTM (PyTorch gate order i, f, g, o).

    Inputs:
      maxlen_ref: (1,)       i32  SMEM  max(lens) -> pass-1 trip count
      lens_ref:   (B, 1)     i32  VMEM  per-row valid lengths (0 for pad rows)
      gx_ref:     (S, B, 4H) f32  VMEM  x @ W_ih + bias (precomputed)
      whh_ref:    (H, 4H)    bf16 VMEM  recurrent weights
    Output:
      out_ref:    (S, B, H)  bf16 VMEM  pass-2 hidden states
    Scratch:
      h_sc/c_sc:   (B, H) f32  pass-1 running state
      h0_sc/c0_sc: (B, H) f32  captured (hn, cn)
    """

    def kernel(maxlen_ref, lens_ref, gx_ref, whh_ref, out_ref,
               h_sc, c_sc, h0_sc, c0_sc):

        def recur(h_f32, c_f32, gx_t):
            # Recurrent matmul in bf16 on the MXU; bias already folded into gx.
            gates = gx_t + jnp.dot(h_f32.astype(jnp.bfloat16), whh_ref[...],
                                   preferred_element_type=jnp.float32)  # (B,4H)
            # Gate slices are lane-aligned (H % 128 == 0 at this scale).
            i = jax.nn.sigmoid(gates[:, 0 * H:1 * H])
            f = jax.nn.sigmoid(gates[:, 1 * H:2 * H])
            g = jnp.tanh(gates[:, 2 * H:3 * H])
            o = jax.nn.sigmoid(gates[:, 3 * H:4 * H])
            c_new = f * c_f32 + i * g
            h_new = o * jnp.tanh(c_new)
            return h_new, c_new

        zeros = jnp.zeros((B, H), jnp.float32)
        h_sc[...] = zeros
        c_sc[...] = zeros
        h0_sc[...] = zeros
        c0_sc[...] = zeros

        # ---- Pass 1 (pack_padded_sequence equivalent): zero initial state,
        #      only up to max(lens) steps; capture per-row state at lens[b].
        max_len = maxlen_ref[0]

        @pl.loop(0, max_len)
        def _(t):
            h_new, c_new = recur(h_sc[...], c_sc[...], gx_ref[t])
            h_sc[...] = h_new
            c_sc[...] = c_new
            sel = lens_ref[...] == (t + 1)                       # (B, 1)
            h0_sc[...] = jnp.where(sel, h_new, h0_sc[...])
            c0_sc[...] = jnp.where(sel, c_new, c0_sc[...])

        # ---- Pass 2: full padded sequence from the captured (hn, cn).
        #      Bounded unroll keeps MXU/EUP overlap without vreg spills.
        def body(t, carry):
            h, c = carry
            h, c = recur(h, c, gx_ref[t])
            out_ref[t] = h.astype(jnp.bfloat16)
            return (h, c)

        lax.fori_loop(0, S, body, (h0_sc[...], c0_sc[...]), unroll=4)

    return kernel


_VMEM = pl.BlockSpec(memory_space=pltpu.MemorySpace.VMEM)
_SMEM = pl.BlockSpec(memory_space=pltpu.MemorySpace.SMEM)


def lstm_two_pass(gx, lens_pad, max_len, w_hh_t):
    S, B, _ = gx.shape
    H = w_hh_t.shape[0]
    return pl.pallas_call(
        _make_lstm_kernel(S, B, H),
        out_shape=jax.ShapeDtypeStruct((S, B, H), jnp.bfloat16),
        in_specs=[_SMEM, _VMEM, _VMEM, _VMEM],
        out_specs=_VMEM,
        scratch_shapes=[
            pltpu.VMEM((B, H), jnp.float32),   # h (pass 1)
            pltpu.VMEM((B, H), jnp.float32),   # c (pass 1)
            pltpu.VMEM((B, H), jnp.float32),   # captured hn
            pltpu.VMEM((B, H), jnp.float32),   # captured cn
        ],
        compiler_params=pltpu.CompilerParams(vmem_limit_bytes=32 * 1024 * 1024),
    )(max_len, lens_pad, gx, w_hh_t)


# --------------------------- Kernel 3: fused heads ---------------------------

def _make_head_kernel(bounds):
    """One (rows, H) @ (H, Vpad) matmul + per-head log-softmax.

    `bounds` = static list of lane-aligned (start, end) per head (multiples of
    128).  Padded lanes have bias = -1e30, so exp underflows to exactly 0 and
    no masking / iota is needed; padded lanes are sliced off by the caller.
    """

    def kernel(h_ref, w_ref, b_ref, out_ref):
        logits = (jnp.dot(h_ref[...], w_ref[...],
                          preferred_element_type=jnp.float32)
                  + b_ref[...])                                   # (rows, Vpad)
        for (s, e) in bounds:                                     # lane-aligned
            slab = logits[:, s:e]
            m = jnp.max(slab, axis=-1, keepdims=True)
            z = slab - m                                          # <= 0: exp safe
            p = jnp.exp(z)                                        # pad lanes -> 0
            lse = jnp.log(jnp.sum(p, axis=-1, keepdims=True))
            out_ref[:, s:e] = z - lse
    return kernel


def head_logsoftmax(h_flat_pad, w_cat, b_cat, bounds, tile_rows):
    N_pad, H = h_flat_pad.shape
    Vpad = w_cat.shape[1]
    return pl.pallas_call(
        _make_head_kernel(bounds),
        # TODO(synk): emit bf16 here at real vocab scale if tolerance allows
        # (halves the dominant HBM write of the head stage).
        out_shape=jax.ShapeDtypeStruct((N_pad, Vpad), jnp.float32),
        grid=(N_pad // tile_rows,),
        in_specs=[
            pl.BlockSpec((tile_rows, H), lambda i: (i, 0)),
            pl.BlockSpec((H, Vpad), lambda i: (0, 0)),
            pl.BlockSpec((1, Vpad), lambda i: (0, 0)),
        ],
        out_specs=pl.BlockSpec((tile_rows, Vpad), lambda i: (i, 0)),
        compiler_params=pltpu.CompilerParams(
            dimension_semantics=("parallel",),
            vmem_limit_bytes=32 * 1024 * 1024),
    )(h_flat_pad, w_cat, b_cat)


# ----------------------- Model (params + forward) ---------------------------

def init_params(key, pad_sizes, hidden):
    emb_sizes = [compute_embed_dim(p - 3) for p in pad_sizes]
    E = sum(emb_sizes)
    nf = len(pad_sizes)
    keys = jax.random.split(key, 4 + 3 * nf)

    params = {"emb": [], "lin_w_t": [], "lin_b": []}
    for i in range(nf):
        params["emb"].append(
            jax.random.normal(keys[4 + i], (pad_sizes[i], emb_sizes[i]), jnp.float32))

    # LSTM weights (PyTorch gate order i, f, g, o), stored transposed.
    bound_ih = (6.0 / (4 * hidden + E)) ** 0.5            # xavier uniform
    w_ih = jax.random.uniform(keys[0], (4 * hidden, E), jnp.float32,
                              -bound_ih, bound_ih)
    w_hh_raw = jax.random.normal(keys[1], (4 * hidden, hidden), jnp.float32)
    w_hh, _ = jnp.linalg.qr(w_hh_raw)                      # orthogonal-ish (4H, H)
    bias = jnp.zeros((4 * hidden,), jnp.float32)
    bias = bias.at[hidden:2 * hidden].set(2.0)             # bias_ih + bias_hh, forget=1 each
    params["w_ih_t"] = w_ih.T                              # (E, 4H)
    params["w_hh_t"] = w_hh.T                              # (H, 4H)
    params["bias"] = bias.reshape(1, 4 * hidden)

    # Output linears
    bound_l = 1.0 / (hidden ** 0.5)
    for i in range(nf):
        params["lin_w_t"].append(
            jax.random.uniform(keys[4 + nf + i], (hidden, pad_sizes[i]),
                               jnp.float32, -bound_l, bound_l))
        params["lin_b"].append(
            jax.random.uniform(keys[4 + 2 * nf + i], (pad_sizes[i],),
                               jnp.float32, -bound_l, bound_l))
    return params, emb_sizes


def lm_forward_pallas(params, feats, lens):
    nf = len(feats)
    embs = [params["emb"][i][feats[i]] for i in range(nf)]       # (B, S, e_i) gathers (glue)
    x = jnp.concatenate(embs, axis=2)                            # (B, S, E)
    x = jnp.transpose(x, (1, 0, 2))                              # (S, B, E) time-major
    S, B, E = x.shape
    H = params["w_hh_t"].shape[0]

    # --- alignment padding: batch -> sublane multiple (8), E -> lane multiple (128)
    B_pad = _round_up(B, 8)
    E_pad = _round_up(E, 128)
    x = jnp.pad(x, ((0, 0), (0, B_pad - B), (0, E_pad - E))).astype(jnp.bfloat16)
    lens_i32 = lens.astype(jnp.int32)
    lens_pad = jnp.pad(lens_i32, (0, B_pad - B)).reshape(B_pad, 1)
    max_len = jnp.max(lens_i32).reshape(1)                       # SMEM scalar

    w_ih_t = jnp.pad(params["w_ih_t"],
                     ((0, E_pad - E), (0, 0))).astype(jnp.bfloat16)   # (Ep, 4H)
    w_hh_t = params["w_hh_t"].astype(jnp.bfloat16)                    # (H, 4H)
    bias = params["bias"].astype(jnp.float32)                         # (1, 4H)

    # --- 1) hoisted input projection (bias folded), chunked/parallel over S
    sc = max(1, min(S, 256 // B_pad))
    while S % sc != 0:
        sc -= 1
    gx = input_projection(x, w_ih_t, bias, sc)                   # (S, B_pad, 4H) f32

    # --- 2) serial two-pass recurrence
    out = lstm_two_pass(gx, lens_pad, max_len, w_hh_t)           # (S, B_pad, H) bf16

    # --- 3) fused, lane-dense heads (each vocab padded to its own x128 slab)
    vs = [params["lin_w_t"][i].shape[1] for i in range(nf)]
    vps = [_round_up(v, 128) for v in vs]
    offs = np.cumsum([0] + vps)
    V_pad = int(offs[-1])
    bounds = [(int(offs[i]), int(offs[i + 1])) for i in range(nf)]

    w_blocks, b_blocks = [], []
    for i in range(nf):
        w_blocks.append(jnp.pad(params["lin_w_t"][i],
                                ((0, 0), (0, vps[i] - vs[i]))))
        # padded lanes get a very negative bias -> exp underflows to 0 in-kernel
        b_blocks.append(jnp.pad(params["lin_b"][i], (0, vps[i] - vs[i]),
                                constant_values=-1e30))
    w_cat = jnp.concatenate(w_blocks, axis=1).astype(jnp.bfloat16)    # (H, Vpad)
    b_cat = jnp.concatenate(b_blocks, axis=0).reshape(1, V_pad).astype(jnp.float32)

    N = S * B_pad
    TILE_ROWS = 256                       # fills MXU rows on v6e/v7x (>=128 for v5e)
    N_pad = _round_up(N, TILE_ROWS)
    flat = out.reshape(N, H)
    flat = jnp.pad(flat, ((0, N_pad - N), (0, 0)))

    logp = head_logsoftmax(flat, w_cat, b_cat, bounds, TILE_ROWS)     # (N_pad, Vpad)
    logp = logp[:N].reshape(S, B_pad, V_pad)

    results = []
    for i in range(nf):
        s = bounds[i][0]
        li = logp[:, :B, s:s + vs[i]]                            # (S, B, V_i)
        results.append(jnp.transpose(li, (1, 2, 0)))             # (B, V_i, S)
    return results


# ----------------------------- Pure-JAX reference ---------------------------

def _lstm_ref(x, lens, w_ih_t, w_hh_t, bias):
    S, B, _ = x.shape
    H = w_hh_t.shape[0]

    def cell(h, c, xt):
        gates = xt @ w_ih_t + h @ w_hh_t + bias
        i = jax.nn.sigmoid(gates[:, 0 * H:1 * H])
        f = jax.nn.sigmoid(gates[:, 1 * H:2 * H])
        g = jnp.tanh(gates[:, 2 * H:3 * H])
        o = jax.nn.sigmoid(gates[:, 3 * H:4 * H])
        c_new = f * c + i * g
        return o * jnp.tanh(c_new), c_new

    h = c = jnp.zeros((B, H), jnp.float32)
    h0 = c0 = jnp.zeros((B, H), jnp.float32)
    for t in range(S):
        h, c = cell(h, c, x[t])
        sel = lens.reshape(B, 1) == (t + 1)
        h0 = jnp.where(sel, h, h0)
        c0 = jnp.where(sel, c, c0)
    h, c = h0, c0
    outs = []
    for t in range(S):
        h, c = cell(h, c, x[t])
        outs.append(h)
    return jnp.stack(outs)


def lm_forward_ref(params, feats, lens):
    nf = len(feats)
    embs = [params["emb"][i][feats[i]] for i in range(nf)]
    x = jnp.transpose(jnp.concatenate(embs, axis=2), (1, 0, 2))
    out = _lstm_ref(x, lens, params["w_ih_t"], params["w_hh_t"], params["bias"])
    results = []
    for i in range(nf):
        logits = out @ params["lin_w_t"][i] + params["lin_b"][i]
        logp = jax.nn.log_softmax(logits, axis=2)
        results.append(jnp.transpose(logp, (1, 2, 0)))
    return results


# ----------------------------- Main ------------------------------------------

if __name__ == "__main__":
    # Small shapes: 2 features with vocab (pad) sizes 11 and 19,
    # batch=4, seq=8, lstm hidden scaled down to 128.
    pad_sizes = [11, 19]
    B, S, HIDDEN = 4, 8, 128

    key = jax.random.PRNGKey(0)
    pkey, f0key, f1key = jax.random.split(key, 3)
    params, emb_sizes = init_params(pkey, pad_sizes, HIDDEN)

    feats = [
        jax.random.randint(f0key, (B, S), 0, pad_sizes[0], dtype=jnp.int32),
        jax.random.randint(f1key, (B, S), 0, pad_sizes[1], dtype=jnp.int32),
    ]
    lens = jnp.array([8, 5, 3, 7], dtype=jnp.int32)   # padded-sequence lengths (<= S)

    outs = lm_forward_pallas(params, feats, lens)
    outs = [jax.block_until_ready(o) for o in outs]

    refs = lm_forward_ref(params, feats, lens)
    for i, (o, r) in enumerate(zip(outs, refs)):
        assert o.shape == (B, pad_sizes[i], S), (o.shape, (B, pad_sizes[i], S))
        max_diff = float(jnp.max(jnp.abs(o - r)))
        # bf16 matmul operands (f32 accumulation) vs the f32 reference.
        assert max_diff < 1e-1, f"feature {i}: max diff {max_diff}"

    print("KERNEL_OK")
</pallas_src>

<mosaic_0001>
module attributes {stable_mosaic.version = 11 : i64} {
  func.func @_proj_kernel(%arg0: i32, %arg1: memref<8x8x128xbf16, #tpu.memory_space<vmem>>, %arg2: memref<128x512xbf16, #tpu.memory_space<vmem>>, %arg3: memref<1x512xf32, #tpu.memory_space<vmem>>, %arg4: memref<8x8x512xf32, #tpu.memory_space<vmem>>) attributes {dimension_semantics = [#tpu.dimension_semantics<parallel>], iteration_bounds = array<i64: 1>, scalar_prefetch = 0 : i64, scratch_operands = 0 : i64, tpu.core_type = #tpu.core_type<tc>, window_params = [{transform_indices = @transform_0, window_bounds = array<i64: 8, 8, 128>}, {pipeline_mode = #tpu.pipeline_mode<synchronous>, transform_indices = @transform_1, window_bounds = array<i64: 128, 512>}, {pipeline_mode = #tpu.pipeline_mode<synchronous>, transform_indices = @transform_2, window_bounds = array<i64: 1, 512>}, {transform_indices = @transform_3, window_bounds = array<i64: 8, 8, 512>}]} {
    %c0 = arith.constant 0 : index
    %c0_0 = arith.constant 0 : index
    %c0_1 = arith.constant 0 : index
    %0 = vector.load %arg1[%c0, %c0_0, %c0_1] : memref<8x8x128xbf16, #tpu.memory_space<vmem>>, vector<8x8x128xbf16>
    %1 = vector.shape_cast %0 : vector<8x8x128xbf16> to vector<64x128xbf16>
    %c0_2 = arith.constant 0 : index
    %c0_3 = arith.constant 0 : index
    %2 = vector.load %arg2[%c0_2, %c0_3] : memref<128x512xbf16, #tpu.memory_space<vmem>>, vector<128x512xbf16>
    %cst = arith.constant dense<0.000000e+00> : vector<64x512xf32>
    %3 = tpu.matmul %1, %2, %cst {dimension_numbers = #tpu.dot_dimension_numbers<[1], [0], [0], [1], [0, 0, 1, 1], [], []>} : vector<64x128xbf16>, vector<128x512xbf16>, vector<64x512xf32> -> vector<64x512xf32>
    %c0_4 = arith.constant 0 : index
    %c0_5 = arith.constant 0 : index
    %4 = vector.load %arg3[%c0_4, %c0_5] : memref<1x512xf32, #tpu.memory_space<vmem>>, vector<1x512xf32>
    %5 = vector.broadcast %4 : vector<1x512xf32> to vector<64x512xf32>
    %6 = arith.addf %3, %5 : vector<64x512xf32>
    %7 = vector.shape_cast %6 : vector<64x512xf32> to vector<8x8x512xf32>
    %c0_6 = arith.constant 0 : index
    %c0_7 = arith.constant 0 : index
    %c0_8 = arith.constant 0 : index
    %8 = vector.load %arg4[%c0_6, %c0_7, %c0_8] : memref<8x8x512xf32, #tpu.memory_space<vmem>>, vector<8x8x512xf32>
    tpu.vector_store %arg4[%c0_6, %c0_7, %c0_8], %7 {strides = array<i32>} : memref<8x8x512xf32, #tpu.memory_space<vmem>>, vector<8x8x512xf32>,
    return
  }
  func.func @transform_0(%arg0: i32) -> (i32, i32, i32) {
    %c0_i32 = arith.constant 0 : i32
    %c0_i32_0 = arith.constant 0 : i32
    %c0_i32_1 = arith.constant 0 : i32
    return %arg0, %c0_i32, %c0_i32_0 : i32, i32, i32
  }
  func.func @transform_1(%arg0: i32) -> (i32, i32) {
    %c0_i32 = arith.constant 0 : i32
    %c0_i32_0 = arith.constant 0 : i32
    %c0_i32_1 = arith.constant 0 : i32
    return %c0_i32, %c0_i32_0 : i32, i32
  }
  func.func @transform_2(%arg0: i32) -> (i32, i32) {
    %c0_i32 = arith.constant 0 : i32
    %c0_i32_0 = arith.constant 0 : i32
    %c0_i32_1 = arith.constant 0 : i32
    return %c0_i32, %c0_i32_0 : i32, i32
  }
  func.func @transform_3(%arg0: i32) -> (i32, i32, i32) {
    %c0_i32 = arith.constant 0 : i32
    %c0_i32_0 = arith.constant 0 : i32
    %c0_i32_1 = arith.constant 0 : i32
    return %arg0, %c0_i32, %c0_i32_0 : i32, i32, i32
  }
}

</mosaic_0001>

<bundles_post_ra>
// kernel: tpu_custom_call.1
= control target key start
LH: loop header
LB: loop body
LE: loop exit
PB: predicated region body
PF: predicated region fallthrough
CT: control target
= control target key end

     0   :  { %8 = vsyncpa [#allocation3], 0  ;;  %s773_s0 = inlined_call_operand.hbm [shape: bf16[8,8,128], index: 0, kind: input, shape index: {}]   ;;  %s774_s1 = inlined_call_operand.hbm [shape: bf16[128,512], index: 1, kind: input, shape index: {}]   ;;  %s775_s2 = inlined_call_operand.vmem [shape: f32[1,512], index: 2, kind: input, shape index: {}]   ;;  %s776_s3 = inlined_call_operand.hbm [shape: f32[8,8,512], index: 3, kind: output, shape index: {}]  }
   0x1   :  { %9 = vsyncpa [#allocation6], 0 }
   0x2   :  { %10 = vsyncpa [#allocation4], 0  ;;  %s656_s12 = smov [#allocation2]   ;;  %s584_s16 = scalar_lea.hbm %s773_s0, 512 }
   0x3   :  { %s16_s13 = sshll.u32 %s656_s12, 4  ;;  %p585_p0 = scmp.ne.s32.totalorder %s773_s0, %s584_s16  ;;  %s17_s13 = int_to_ptr.vmem [resolvable:$true] %s16_s13 }
   0x4   :  { %p588_p1 = scmp.lt.u32.totalorder %s584_s16, %s773_s0 }
   0x6   :  { %p590_p2 = pnand %p588_p1, %p585_p0 }
   0x8   :  { %593 = shalt.err (!%p590_p2)
}
   0x9   :  { %s594_s21 = scalar_lea.vmem %s17_s13, 512  ;;  %p599_p4 = scmp.lt.s32.totalorder %s17_s13, %s17_s13 }
   0xa   :  { %p595_p3 = scmp.ne.s32.totalorder %s17_s13, %s594_s21  ;;  %p600_p5 = scmp.lt.s32.totalorder %s594_s21, %s594_s21 }
   0xc   :  { %p601_p6 = por %p600_p5, %p599_p4 }
   0xe   :  { %p602_p7 = pnand %p601_p6, %p595_p3 }
  0x10   :  { %605 = shalt.err (!%p602_p7)
}
  0x11   :  { %s657_s22 = smov 64   ;;  %s658_s23 = smov 4  }
  0x12   :  { %22 = dma.hbm_to_vmem [thread:$0]  %s773_s0, 512, %s17_s13, [#allocation3], %s657_s22, %s657_s22, %s658_s23  }
  0x13   :  { %s659_s26 = smov [#allocation5]   ;;  %s606_s30 = scalar_lea.hbm %s774_s1, 4096 }
  0x14   :  { %s28_s27 = sshll.u32 %s659_s26, 4  ;;  %p607_p8 = scmp.ne.s32.totalorder %s774_s1, %s606_s30  ;;  %s29_s27 = int_to_ptr.vmem [resolvable:$true] %s28_s27 }
  0x15   :  { %p610_p9 = scmp.lt.u32.totalorder %s606_s30, %s774_s1 }
  0x17   :  { %p612_p10 = pnand %p610_p9, %p607_p8 }
  0x19   :  { %615 = shalt.err (!%p612_p10)
}
  0x1a   :  { %s616_s8 = scalar_lea.vmem %s29_s27, 4096  ;;  %p621_p12 = scmp.lt.s32.totalorder %s29_s27, %s29_s27 }
  0x1b   :  { %p617_p11 = scmp.ne.s32.totalorder %s29_s27, %s616_s8  ;;  %p622_p13 = scmp.lt.s32.totalorder %s616_s8, %s616_s8 }
  0x1d   :  { %p623_p0 = por %p622_p13, %p621_p12 }
  0x1f   :  { %p624_p1 = pnand %p623_p0, %p617_p11 }
  0x21   :  { %627 = shalt.err (!%p624_p1)
}
  0x22   :  { %s660_s0 = smov 256   ;;  %s661_s9 = smov 16  }
  0x23   :  { %34 = dma.hbm_to_vmem [thread:$0]  %s774_s1, 4096, %s29_s27, [#allocation6], %s660_s0, %s660_s0, %s661_s9  }
  0x24   :  { %650 = dma.done.wait [#allocation3], 512  }
  0x25   :  { %651 = vsyncadd [#allocation3], 4294966784 }
  0x26   :  { %652 = dma.done.wait [#allocation6], 4096  }
  0x27   :  { %653 = vsyncadd [#allocation6], 4294963200  ;;  %v662_v0 = vmov 0   ;;  %v532_v1 = vld [vmem:[#allocation5 + $0x4] ss:$16 sps:$4 sm:$0xff]   ;;  %v581_v34 = vld [vmem:[#allocation2 + $0x8] sm:$0xff]   ;;  %v86_v37 = vlaneseq }
  0x28   :  { %322 = vmatprep.mubr.bf16.mxu0 %v662_v0  ;;  %395 = vmatprep.mubr.bf16.mxu1 %v662_v0  ;;  %v534_v2 = vld [vmem:[#allocation5 + $0xc] ss:$16 sps:$4 sm:$0xff]   ;;  %v536_v3 = vld [vmem:[#allocation5] ss:$16 sps:$4 sm:$0xff]   ;;  %v537_v4 = vld [vmem:[#allocation5 + $0x8] ss:$16 sps:$4 sm:$0xff]  }
  0x29   :  { %290 = vmatprep.subr.bf16.mxu0 %v532_v1  ;;  %363 = vmatprep.subr.bf16.mxu1 %v534_v2  ;;  %v538_v5 = vld [vmem:[#allocation5 + $0x24] ss:$16 sps:$4 sm:$0xff]   ;;  %v540_v6 = vld [vmem:[#allocation5 + $0x2c] ss:$16 sps:$4 sm:$0xff]   ;;  %v542_v7 = vld [vmem:[#allocation5 + $0x20] ss:$16 sps:$4 sm:$0xff]  }
  0x2a   :  { %291 = vmatpush1.bf16.msra.mxu0 %v536_v3  ;;  %364 = vmatpush1.bf16.msra.mxu1 %v537_v4  ;;  %v543_v8 = vld [vmem:[#allocation5 + $0x28] ss:$16 sps:$4 sm:$0xff]   ;;  %v544_v9 = vld [vmem:[#allocation5 + $0x44] ss:$16 sps:$4 sm:$0xff]   ;;  %v546_v10 = vld [vmem:[#allocation5 + $0x4c] ss:$16 sps:$4 sm:$0xff]  }
  0x2b   :  { %292 = vmatprep.subr.bf16.mxu0 %v538_v5  ;;  %365 = vmatprep.subr.bf16.mxu1 %v540_v6  ;;  %v548_v11 = vld [vmem:[#allocation5 + $0x40] ss:$16 sps:$4 sm:$0xff]   ;;  %v549_v12 = vld [vmem:[#allocation5 + $0x48] ss:$16 sps:$4 sm:$0xff]   ;;  %v550_v13 = vld [vmem:[#allocation5 + $0x64] ss:$16 sps:$4 sm:$0xff]  }
  0x2c   :  { %v552_v14 = vld [vmem:[#allocation5 + $0x6c] ss:$16 sps:$4 sm:$0xff]   ;;  %v554_v15 = vld [vmem:[#allocation5 + $0x60] ss:$16 sps:$4 sm:$0xff]   ;;  %v555_v16 = vld [vmem:[#allocation5 + $0x68] ss:$16 sps:$4 sm:$0xff]  }
  0x2d   :  { %v556_v17 = vld [vmem:[#allocation5 + $0x84] ss:$16 sps:$4 sm:$0xff]   ;;  %v558_v18 = vld [vmem:[#allocation5 + $0x8c] ss:$16 sps:$4 sm:$0xff]   ;;  %v560_v19 = vld [vmem:[#allocation5 + $0x80] ss:$16 sps:$4 sm:$0xff]  }
  0x2e   :  { %293 = vmatpush1.bf16.msra.mxu0 %v542_v7  ;;  %366 = vmatpush1.bf16.msra.mxu1 %v543_v8  ;;  %v561_v20 = vld [vmem:[#allocation5 + $0x88] ss:$16 sps:$4 sm:$0xff]   ;;  %v562_v21 = vld [vmem:[#allocation5 + $0xa4] ss:$16 sps:$4 sm:$0xff]   ;;  %v564_v22 = vld [vmem:[#allocation5 + $0xac] ss:$16 sps:$4 sm:$0xff]  }
  0x2f   :  { %294 = vmatprep.subr.bf16.mxu0 %v544_v9  ;;  %367 = vmatprep.subr.bf16.mxu1 %v546_v10  ;;  %v566_v23 = vld [vmem:[#allocation5 + $0xa0] ss:$16 sps:$4 sm:$0xff]   ;;  %v567_v24 = vld [vmem:[#allocation5 + $0xa8] ss:$16 sps:$4 sm:$0xff]   ;;  %v568_v25 = vld [vmem:[#allocation5 + $0xc4] ss:$16 sps:$4 sm:$0xff]  }
  0x30   :  { %v570_v26 = vld [vmem:[#allocation5 + $0xcc] ss:$16 sps:$4 sm:$0xff]   ;;  %v572_v27 = vld [vmem:[#allocation5 + $0xc0] ss:$16 sps:$4 sm:$0xff]   ;;  %v573_v28 = vld [vmem:[#allocation5 + $0xc8] ss:$16 sps:$4 sm:$0xff]  }
  0x31   :  { %v574_v29 = vld [vmem:[#allocation5 + $0xe4] ss:$16 sps:$4 sm:$0xff]   ;;  %v576_v30 = vld [vmem:[#allocation5 + $0xec] ss:$16 sps:$4 sm:$0xff]   ;;  %v578_v31 = vld [vmem:[#allocation5 + $0xe0] ss:$16 sps:$4 sm:$0xff]  }
  0x32   :  { %295 = vmatpush1.bf16.msra.mxu0 %v548_v11  ;;  %368 = vmatpush1.bf16.msra.mxu1 %v549_v12  ;;  %v579_v32 = vld [vmem:[#allocation5 + $0xe8] ss:$16 sps:$4 sm:$0xff]   ;;  %v580_v33 = vld [vmem:[#allocation2] sm:$0xff]   ;;  %v582_v35 = vld [vmem:[#allocation2 + $0x10] sm:$0xff]   ;;  %v87_v38 = vshrl.u32 %v86_v37, 7 }
  0x33   :  { %296 = vmatprep.subr.bf16.mxu0 %v550_v13  ;;  %369 = vmatprep.subr.bf16.mxu1 %v552_v14  ;;  %v583_v36 = vld [vmem:[#allocation2 + $0x18] sm:$0xff]   ;;  %v84_v41 = vld [vmem:[%s775_s2] sm:$0xf]  ;;  %s663_s2 = smov [#allocation7]  }
  0x34   :  { %v88_v39 = vsub.s32 0, %v87_v38  ;;  %v96_v40 = vsub.s32 2, %v87_v38  ;;  %v92_v42 = vsub.s32 1, %v87_v38  ;;  %v100_v43 = vsub.s32 3, %v87_v38  ;;  %s473_s13 = sshll.u32 %s663_s2, 4  ;;  %s474_s13 = int_to_ptr.vmem [resolvable:$true] %s473_s13 }
  0x35   :  { %s628_s14 = scalar_lea.vmem %s474_s13, 4096  ;;  %p633_p3 = scmp.lt.s32.totalorder %s474_s13, %s474_s13 }
  0x36   :  { %297 = vmatpush1.bf16.msra.mxu0 %v554_v15  ;;  %370 = vmatpush1.bf16.msra.mxu1 %v555_v16  ;;  %v721_v44 = vrot.slane %v84_v41, %v88_v39  ;;  %v723_v45 = vrot.slane %v84_v41, %v96_v40  ;;  %v725_v46 = vrot.slane %v84_v41, %v92_v42  ;;  %p629_p2 = scmp.ne.s32.totalorder %s474_s13, %s628_s14  ;;  %p634_p4 = scmp.lt.s32.totalorder %s628_s14, %s628_s14 }
  0x37   :  { %298 = vmatprep.subr.bf16.mxu0 %v556_v17  ;;  %371 = vmatprep.subr.bf16.mxu1 %v558_v18  ;;  %v727_v47 = vrot.slane %v84_v41, %v100_v43 }
  0x38   :  { %p635_p5 = por %p634_p4, %p633_p3 }
  0x3a   :  { %299 = vmatpush1.bf16.msra.mxu0 %v560_v19  ;;  %372 = vmatpush1.bf16.msra.mxu1 %v561_v20  ;;  %p636_p6 = pnand %p635_p5, %p629_p2 }
  0x3b   :  { %300 = vmatprep.subr.bf16.mxu0 %v562_v21  ;;  %373 = vmatprep.subr.bf16.mxu1 %v564_v22 }
  0x3e   :  { %301 = vmatpush1.bf16.msra.mxu0 %v566_v23  ;;  %374 = vmatpush1.bf16.msra.mxu1 %v567_v24 }
  0x3f   :  { %302 = vmatprep.subr.bf16.mxu0 %v568_v25  ;;  %375 = vmatprep.subr.bf16.mxu1 %v570_v26 }
  0x42   :  { %303 = vmatpush1.bf16.msra.mxu0 %v572_v27  ;;  %376 = vmatpush1.bf16.msra.mxu1 %v573_v28 }
  0x43   :  { %304 = vmatprep.subr.bf16.mxu0 %v574_v29  ;;  %377 = vmatprep.subr.bf16.mxu1 %v576_v30 }
  0x46   :  { %305 = vmatpush1.bf16.msra.mxu0 %v578_v31  ;;  %378 = vmatpush1.bf16.msra.mxu1 %v579_v32 }
  0x49   :  { %323 = vmatmul.mubr.bf16.vlgmr.msra.gmra.mrb[0].mxu0 %v580_v33  ;;  %396 = vmatmul.mubr.bf16.vlgmr.msra.gmra.mrb[0].mxu1 %v580_v33 }
  0x4a   :  { %332 = vmatprep.mubr.bf16.mxu0 %v662_v0  ;;  %405 = vmatprep.mubr.bf16.mxu1 %v662_v0 }
  0x51   :  { %333 = vmatmul.mubr.bf16.gmra.mrb[4].mxu0 %v581_v34  ;;  %406 = vmatmul.mubr.bf16.gmra.mrb[4].mxu1 %v581_v34 }
  0x52   :  { %342 = vmatprep.mubr.bf16.mxu0 %v662_v0  ;;  %415 = vmatprep.mubr.bf16.mxu1 %v662_v0 }
  0x59   :  { %343 = vmatmul.mubr.bf16.gmra.mrb[8].mxu0 %v582_v35  ;;  %416 = vmatmul.mubr.bf16.gmra.mrb[8].mxu1 %v582_v35 }
  0x5a   :  { %352 = vmatprep.mubr.bf16.mxu0 %v662_v0  ;;  %425 = vmatprep.mubr.bf16.mxu1 %v662_v0 }
  0x61   :  { %353 = vmatmul.mubr.bf16.gmra.mrb[12].mxu0 %v583_v36  ;;  %426 = vmatmul.mubr.bf16.gmra.mrb[12].mxu1 %v583_v36 }
 0x11c   :  { %v324_v48 = vpop.f32.mrb[0].mxu0  ;;  %v397_v49 = vpop.f32.mrb[0].mxu1 }
 0x11d   :  { %v325_v50 = vadd.f32 %v324_v48, %v721_v44  ;;  %v398_v51 = vadd.f32 %v397_v49, %v723_v45  ;;  %v326_v52 = vpop.f32.mrb[1].mxu0  ;;  %v399_v53 = vpop.f32.mrb[1].mxu1 }
 0x11e   :  { %v327_v54 = vadd.f32 %v326_v52, %v725_v46  ;;  %v400_v55 = vadd.f32 %v399_v53, %v727_v47  ;;  %v328_v56 = vpop.f32.mrb[2].mxu0  ;;  %v401_v57 = vpop.f32.mrb[2].mxu1 }
 0x11f   :  { %436 = vst [vmem:[#allocation7] sm:$0xff] %v325_v50  ;;  %438 = vst [vmem:[#allocation7 + $0x10] sm:$0xff] %v398_v51  ;;  %v329_v58 = vadd.f32 %v328_v56, %v721_v44  ;;  %v402_v59 = vadd.f32 %v401_v57, %v723_v45  ;;  %v330_v60 = vpop.f32.mrb[3].mxu0  ;;  %v403_v61 = vpop.f32.mrb[3].mxu1 }
 0x120   :  { %437 = vst [vmem:[#allocation7 + $0x8] sm:$0xff] %v327_v54  ;;  %439 = vst [vmem:[#allocation7 + $0x18] sm:$0xff] %v400_v55  ;;  %v331_v62 = vadd.f32 %v330_v60, %v725_v46  ;;  %v404_v63 = vadd.f32 %v403_v61, %v727_v47 }
 0x121   :  { %440 = vst [vmem:[#allocation7 + $0x20] sm:$0xff] %v329_v58  ;;  %442 = vst [vmem:[#allocation7 + $0x30] sm:$0xff] %v402_v59 }
 0x122   :  { %441 = vst [vmem:[#allocation7 + $0x28] sm:$0xff] %v331_v62  ;;  %443 = vst [vmem:[#allocation7 + $0x38] sm:$0xff] %v404_v63 }
 0x124   :  { %v334_v0 = vpop.f32.mrb[4].mxu0  ;;  %v407_v1 = vpop.f32.mrb[4].mxu1 }
 0x125   :  { %v335_v2 = vadd.f32 %v334_v0, %v721_v44  ;;  %v408_v3 = vadd.f32 %v407_v1, %v723_v45  ;;  %v336_v4 = vpop.f32.mrb[5].mxu0  ;;  %v409_v5 = vpop.f32.mrb[5].mxu1 }
 0x126   :  { %v337_v6 = vadd.f32 %v336_v4, %v725_v46  ;;  %v410_v7 = vadd.f32 %v409_v5, %v727_v47  ;;  %v338_v8 = vpop.f32.mrb[6].mxu0  ;;  %v411_v9 = vpop.f32.mrb[6].mxu1 }
 0x127   :  { %444 = vst [vmem:[#allocation7 + $0x40] sm:$0xff] %v335_v2  ;;  %446 = vst [vmem:[#allocation7 + $0x50] sm:$0xff] %v408_v3  ;;  %v339_v10 = vadd.f32 %v338_v8, %v721_v44  ;;  %v412_v11 = vadd.f32 %v411_v9, %v723_v45  ;;  %v340_v12 = vpop.f32.mrb[7].mxu0  ;;  %v413_v13 = vpop.f32.mrb[7].mxu1 }
 0x128   :  { %445 = vst [vmem:[#allocation7 + $0x48] sm:$0xff] %v337_v6  ;;  %447 = vst [vmem:[#allocation7 + $0x58] sm:$0xff] %v410_v7  ;;  %v341_v14 = vadd.f32 %v340_v12, %v725_v46  ;;  %v414_v15 = vadd.f32 %v413_v13, %v727_v47 }
 0x129   :  { %448 = vst [vmem:[#allocation7 + $0x60] sm:$0xff] %v339_v10  ;;  %450 = vst [vmem:[#allocation7 + $0x70] sm:$0xff] %v412_v11 }
 0x12a   :  { %449 = vst [vmem:[#allocation7 + $0x68] sm:$0xff] %v341_v14  ;;  %451 = vst [vmem:[#allocation7 + $0x78] sm:$0xff] %v414_v15 }
 0x12c   :  { %v344_v16 = vpop.f32.mrb[8].mxu0  ;;  %v417_v17 = vpop.f32.mrb[8].mxu1 }
 0x12d   :  { %v345_v18 = vadd.f32 %v344_v16, %v721_v44  ;;  %v418_v19 = vadd.f32 %v417_v17, %v723_v45  ;;  %v346_v20 = vpop.f32.mrb[9].mxu0  ;;  %v419_v21 = vpop.f32.mrb[9].mxu1 }
 0x12e   :  { %v347_v22 = vadd.f32 %v346_v20, %v725_v46  ;;  %v420_v23 = vadd.f32 %v419_v21, %v727_v47  ;;  %v348_v24 = vpop.f32.mrb[10].mxu0  ;;  %v421_v25 = vpop.f32.mrb[10].mxu1 }
 0x12f   :  { %452 = vst [vmem:[#allocation7 + $0x80] sm:$0xff] %v345_v18  ;;  %454 = vst [vmem:[#allocation7 + $0x90] sm:$0xff] %v418_v19  ;;  %v349_v26 = vadd.f32 %v348_v24, %v721_v44  ;;  %v422_v27 = vadd.f32 %v421_v25, %v723_v45  ;;  %v350_v28 = vpop.f32.mrb[11].mxu0  ;;  %v423_v29 = vpop.f32.mrb[11].mxu1 }
 0x130   :  { %453 = vst [vmem:[#allocation7 + $0x88] sm:$0xff] %v347_v22  ;;  %455 = vst [vmem:[#allocation7 + $0x98] sm:$0xff] %v420_v23  ;;  %v351_v30 = vadd.f32 %v350_v28, %v725_v46  ;;  %v424_v31 = vadd.f32 %v423_v29, %v727_v47 }
 0x131   :  { %456 = vst [vmem:[#allocation7 + $0xa0] sm:$0xff] %v349_v26  ;;  %458 = vst [vmem:[#allocation7 + $0xb0] sm:$0xff] %v422_v27 }
 0x132   :  { %457 = vst [vmem:[#allocation7 + $0xa8] sm:$0xff] %v351_v30  ;;  %459 = vst [vmem:[#allocation7 + $0xb8] sm:$0xff] %v424_v31 }
 0x134   :  { %v354_v32 = vpop.f32.mrb[12].mxu0  ;;  %v427_v33 = vpop.f32.mrb[12].mxu1 }
 0x135   :  { %v355_v34 = vadd.f32 %v354_v32, %v721_v44  ;;  %v428_v35 = vadd.f32 %v427_v33, %v723_v45  ;;  %v356_v36 = vpop.f32.mrb[13].mxu0  ;;  %v429_v37 = vpop.f32.mrb[13].mxu1 }
 0x136   :  { %v357_v38 = vadd.f32 %v356_v36, %v725_v46  ;;  %v430_v39 = vadd.f32 %v429_v37, %v727_v47  ;;  %v358_v40 = vpop.f32.mrb[14].mxu0  ;;  %v431_v41 = vpop.f32.mrb[14].mxu1 }
 0x137   :  { %460 = vst [vmem:[#allocation7 + $0xc0] sm:$0xff] %v355_v34  ;;  %462 = vst [vmem:[#allocation7 + $0xd0] sm:$0xff] %v428_v35  ;;  %v359_v42 = vadd.f32 %v358_v40, %v721_v44  ;;  %v432_v43 = vadd.f32 %v431_v41, %v723_v45  ;;  %v360_v48 = vpop.f32.mrb[15].mxu0  ;;  %v433_v49 = vpop.f32.mrb[15].mxu1 }
 0x138   :  { %461 = vst [vmem:[#allocation7 + $0xc8] sm:$0xff] %v357_v38  ;;  %463 = vst [vmem:[#allocation7 + $0xd8] sm:$0xff] %v430_v39  ;;  %v361_v50 = vadd.f32 %v360_v48, %v725_v46  ;;  %v434_v51 = vadd.f32 %v433_v49, %v727_v47 }
 0x139   :  { %464 = vst [vmem:[#allocation7 + $0xe0] sm:$0xff] %v359_v42  ;;  %466 = vst [vmem:[#allocation7 + $0xf0] sm:$0xff] %v432_v43 }
 0x13a   :  { %465 = vst [vmem:[#allocation7 + $0xe8] sm:$0xff] %v361_v50  ;;  %467 = vst [vmem:[#allocation7 + $0xf8] sm:$0xff] %v434_v51 }
 0x13b   :  { %639 = shalt.err (!%p636_p6)
}
 0x13c   :  { %s640_s17 = scalar_lea.hbm %s776_s3, 4096 }
 0x13d   :  { %p641_p7 = scmp.ne.s32.totalorder %s776_s3, %s640_s17  ;;  %p644_p8 = scmp.lt.u32.totalorder %s640_s17, %s776_s3 }
 0x13f   :  { %p646_p9 = pnand %p644_p8, %p641_p7 }
 0x141   :  { %649 = shalt.err (!%p646_p9)
}
 0x142   :  { %s664_s22 = smov 512   ;;  %s665_s23 = smov 32  }
 0x143   :  { %479 = dma.vmem_to_hbm [thread:$0]  %s474_s13, 4096, %s776_s3, [#allocation4], %s664_s22, %s664_s22, %s665_s23  }
 0x144   :  { %654 = dma.done.wait [#allocation4], 4096  }
 0x145   :  { %655 = vsyncadd [#allocation4], 4294963200 }
 0x146   :  { %483 = vsyncpa [#allocation3], 1 }
 0x147   :  { %484 = vsyncpa [#allocation6], 1 }
 0x148   :  { %485 = vsyncpa [#allocation4], 1 }

</bundles_post_ra>
